<compile_context>
chip_gen: v7x
topology: tpu7x:2x2x1
jax: 0.10.0
libtpu: 0.0.40
codegen_flags: <defaults>
</compile_context>

<pallas_src>
import functools

import jax
import jax.numpy as jnp
from jax import lax
from jax.experimental import pallas as pl
from jax.experimental.pallas import tpu as pltpu


def _round_up(x, m):
    return ((x + m - 1) // m) * m


def attend_kernel(a_ref, b_ref, w1t_ref, b1_ref, w2t_ref, b2_ref, out_ref,
                  *, la, lb):
    # Blocks: a_ref (1, La, D), b_ref (1, Lb, D), out_ref (1, La, Lb_pad).
    a = a_ref[0]                      # (La, D)
    b = b_ref[0]                      # (Lb, D)
    w1t = w1t_ref[...]                # (D, H)  pre-transposed in wrapper
    b1 = b1_ref[...]                  # (1, H)
    w2t = w2t_ref[...]                # (H, H)  pre-transposed in wrapper
    b2 = b2_ref[...]                  # (1, H)

    # Run the 2-layer ReLU MLP once over the concatenation of a- and b-rows.
    # (Dropout is p=0.0 in this config -> identity.)
    x = jnp.concatenate([a, b], axis=0)                                 # (La+Lb, D)
    h = jnp.maximum(jnp.dot(x, w1t, preferred_element_type=jnp.float32) + b1, 0.0)
    f = jnp.maximum(jnp.dot(h, w2t, preferred_element_type=jnp.float32) + b2, 0.0)

    f_a = f[:la]                      # (La, H)
    f_b = f[la:la + lb]               # (Lb, H)

    # Zero-pad f_b rows up to the lane-dense output width so the final store
    # is a full-lane (unmasked) write; wrapper slices the padding off.
    lb_pad = out_ref.shape[2]
    if lb_pad > lb:
        f_b = jnp.concatenate(
            [f_b, jnp.zeros((lb_pad - lb, f_b.shape[1]), dtype=f_b.dtype)],
            axis=0)                   # (Lb_pad, H)

    # f_a @ f_b^T without materializing a transpose: contract the last dims.
    out = lax.dot_general(
        f_a, f_b,
        dimension_numbers=(((1,), (1,)), ((), ())),
        preferred_element_type=jnp.float32)                             # (La, Lb_pad)
    out_ref[0] = out.astype(out_ref.dtype)


def attend(a, b, w1, b1, w2, b2):
    B, La, D = a.shape
    _, Lb, Db = b.shape
    H = w1.shape[0]
    assert Db == D
    # Mirrors the PyTorch module's .view(B, L, n_input) requirement.
    assert H == D, "Attend requires n_hidden == n_input (PyTorch .view constraint)"

    # Hoist loop-invariant weight transposes out of the kernel (done once by XLA).
    w1_t = jnp.transpose(w1)          # (D, H)
    w2_t = jnp.transpose(w2)          # (H, H)
    b1_2d = b1.reshape(1, H)
    b2_2d = b2.reshape(1, H)

    # Lane-dense output width (multiple of 128 lanes); sliced back afterwards.
    Lb_pad = _round_up(Lb, 128)

    kernel = functools.partial(attend_kernel, la=La, lb=Lb)

    out_padded = pl.pallas_call(
        kernel,
        out_shape=jax.ShapeDtypeStruct((B, La, Lb_pad), jnp.float32),
        grid_spec=pltpu.PrefetchScalarGridSpec(
            num_scalar_prefetch=0,
            # Parallel over batch: extent >= 2 keeps both v7x TensorCores busy;
            # a no-op on v5e/v6e. Each step handles both a and b for one batch.
            grid=(B,),
            in_specs=[
                pl.BlockSpec((1, La, D), lambda i: (i, 0, 0)),
                pl.BlockSpec((1, Lb, D), lambda i: (i, 0, 0)),
                # Constant index maps -> weights stay resident in VMEM across
                # grid steps (no re-DMA of loop-invariant blocks).
                pl.BlockSpec((D, H), lambda i: (0, 0)),
                pl.BlockSpec((1, H), lambda i: (0, 0)),
                pl.BlockSpec((H, H), lambda i: (0, 0)),
                pl.BlockSpec((1, H), lambda i: (0, 0)),
            ],
            out_specs=pl.BlockSpec((1, La, Lb_pad), lambda i: (i, 0, 0)),
        ),
        compiler_params=pltpu.CompilerParams(
            dimension_semantics=("parallel",),
        ),
    )(a, b, w1_t, b1_2d, w2_t, b2_2d)

    return out_padded[:, :, :Lb]


def attend_ref(a, b, w1, b1, w2, b2):
    def mlp(x):
        h = jnp.maximum(x @ w1.T + b1, 0.0)
        return jnp.maximum(h @ w2.T + b2, 0.0)
    f_a = mlp(a)
    f_b = mlp(b)
    return jnp.einsum("bld,bmd->blm", f_a, f_b)


if __name__ == "__main__":
    # Small shapes consistent with the module: n_input == n_hidden == 32,
    # max_length (seq) == 8, batch == 2.
    B, La, Lb, D, H = 2, 8, 8, 32, 32

    key = jax.random.PRNGKey(0)
    ka, kb, kw1, kb1, kw2, kb2 = jax.random.split(key, 6)

    a = jax.random.normal(ka, (B, La, D), dtype=jnp.float32)
    b = jax.random.normal(kb, (B, Lb, D), dtype=jnp.float32)

    # Param init mirroring the module: weight ~ N(0, sqrt(2/d_in)),
    # bias uniform in (-1/sqrt(d_in), 1/sqrt(d_in)) (PyTorch Linear default).
    w1 = jax.random.normal(kw1, (H, D), dtype=jnp.float32) * jnp.sqrt(2.0 / D)
    b1 = jax.random.uniform(kb1, (H,), dtype=jnp.float32,
                            minval=-1.0 / jnp.sqrt(D), maxval=1.0 / jnp.sqrt(D))
    w2 = jax.random.normal(kw2, (H, H), dtype=jnp.float32) * jnp.sqrt(2.0 / H)
    b2 = jax.random.uniform(kb2, (H,), dtype=jnp.float32,
                            minval=-1.0 / jnp.sqrt(H), maxval=1.0 / jnp.sqrt(H))

    out = attend(a, b, w1, b1, w2, b2)
    jax.block_until_ready(out)

    ref = attend_ref(a, b, w1, b1, w2, b2)
    assert out.shape == (B, La, Lb)
    assert jnp.allclose(out, ref, atol=1e-4, rtol=1e-4), "mismatch vs reference"

    print("KERNEL_OK")
</pallas_src>

<mosaic_0001>
module attributes {stable_mosaic.version = 11 : i64} {
  func.func @attend_kernel(%arg0: i32, %arg1: memref<1x8x32xf32, #tpu.memory_space<vmem>>, %arg2: memref<1x8x32xf32, #tpu.memory_space<vmem>>, %arg3: memref<32x32xf32, #tpu.memory_space<vmem>>, %arg4: memref<1x32xf32, #tpu.memory_space<vmem>>, %arg5: memref<32x32xf32, #tpu.memory_space<vmem>>, %arg6: memref<1x32xf32, #tpu.memory_space<vmem>>, %arg7: memref<1x8x128xf32, #tpu.memory_space<vmem>>) attributes {dimension_semantics = [#tpu.dimension_semantics<parallel>], iteration_bounds = array<i64: 2>, scalar_prefetch = 0 : i64, scratch_operands = 0 : i64, tpu.core_type = #tpu.core_type<tc>, window_params = [{transform_indices = @transform_0, window_bounds = array<i64: 1, 8, 32>}, {transform_indices = @transform_1, window_bounds = array<i64: 1, 8, 32>}, {pipeline_mode = #tpu.pipeline_mode<synchronous>, transform_indices = @transform_2, window_bounds = array<i64: 32, 32>}, {pipeline_mode = #tpu.pipeline_mode<synchronous>, transform_indices = @transform_3, window_bounds = array<i64: 1, 32>}, {pipeline_mode = #tpu.pipeline_mode<synchronous>, transform_indices = @transform_4, window_bounds = array<i64: 32, 32>}, {pipeline_mode = #tpu.pipeline_mode<synchronous>, transform_indices = @transform_5, window_bounds = array<i64: 1, 32>}, {transform_indices = @transform_6, window_bounds = array<i64: 1, 8, 128>}]} {
    %c0 = arith.constant 0 : index
    %c0_0 = arith.constant 0 : index
    %c0_1 = arith.constant 0 : index
    %0 = vector.load %arg1[%c0, %c0_0, %c0_1] : memref<1x8x32xf32, #tpu.memory_space<vmem>>, vector<1x8x32xf32>
    %1 = vector.shape_cast %0 : vector<1x8x32xf32> to vector<8x32xf32>
    %c0_2 = arith.constant 0 : index
    %c0_3 = arith.constant 0 : index
    %c0_4 = arith.constant 0 : index
    %2 = vector.load %arg2[%c0_2, %c0_3, %c0_4] : memref<1x8x32xf32, #tpu.memory_space<vmem>>, vector<1x8x32xf32>
    %3 = vector.shape_cast %2 : vector<1x8x32xf32> to vector<8x32xf32>
    %c0_5 = arith.constant 0 : index
    %c0_6 = arith.constant 0 : index
    %4 = vector.load %arg3[%c0_5, %c0_6] : memref<32x32xf32, #tpu.memory_space<vmem>>, vector<32x32xf32>
    %c0_7 = arith.constant 0 : index
    %c0_8 = arith.constant 0 : index
    %5 = vector.load %arg4[%c0_7, %c0_8] : memref<1x32xf32, #tpu.memory_space<vmem>>, vector<1x32xf32>
    %c0_9 = arith.constant 0 : index
    %c0_10 = arith.constant 0 : index
    %6 = vector.load %arg5[%c0_9, %c0_10] : memref<32x32xf32, #tpu.memory_space<vmem>>, vector<32x32xf32>
    %c0_11 = arith.constant 0 : index
    %c0_12 = arith.constant 0 : index
    %7 = vector.load %arg6[%c0_11, %c0_12] : memref<1x32xf32, #tpu.memory_space<vmem>>, vector<1x32xf32>
    %8 = tpu.concatenate %1, %3 in 0 : vector<8x32xf32>, vector<8x32xf32> -> vector<16x32xf32>
    %cst = arith.constant dense<0.000000e+00> : vector<16x32xf32>
    %9 = tpu.matmul %8, %4, %cst {dimension_numbers = #tpu.dot_dimension_numbers<[1], [0], [0], [1], [0, 0, 1, 1], [], []>} : vector<16x32xf32>, vector<32x32xf32>, vector<16x32xf32> -> vector<16x32xf32>
    %10 = vector.broadcast %5 : vector<1x32xf32> to vector<16x32xf32>
    %11 = arith.addf %9, %10 : vector<16x32xf32>
    %cst_13 = arith.constant 0.000000e+00 : f32
    %12 = vector.broadcast %cst_13 : f32 to vector<16x32xf32>
    %13 = arith.maximumf %11, %12 : vector<16x32xf32>
    %cst_14 = arith.constant dense<0.000000e+00> : vector<16x32xf32>
    %14 = tpu.matmul %13, %6, %cst_14 {dimension_numbers = #tpu.dot_dimension_numbers<[1], [0], [0], [1], [0, 0, 1, 1], [], []>} : vector<16x32xf32>, vector<32x32xf32>, vector<16x32xf32> -> vector<16x32xf32>
    %15 = vector.broadcast %7 : vector<1x32xf32> to vector<16x32xf32>
    %16 = arith.addf %14, %15 : vector<16x32xf32>
    %cst_15 = arith.constant 0.000000e+00 : f32
    %17 = vector.broadcast %cst_15 : f32 to vector<16x32xf32>
    %18 = arith.maximumf %16, %17 : vector<16x32xf32>
    %19 = vector.extract_strided_slice %18 {offsets = [0, 0], sizes = [8, 32], strides = [1, 1]} : vector<16x32xf32> to vector<8x32xf32>
    %20 = vector.extract_strided_slice %18 {offsets = [8, 0], sizes = [8, 32], strides = [1, 1]} : vector<16x32xf32> to vector<8x32xf32>
    %cst_16 = arith.constant 0.000000e+00 : f32
    %21 = vector.broadcast %cst_16 : f32 to vector<120x32xf32>
    %22 = tpu.concatenate %20, %21 in 0 : vector<8x32xf32>, vector<120x32xf32> -> vector<128x32xf32>
    %cst_17 = arith.constant dense<0.000000e+00> : vector<8x128xf32>
    %23 = tpu.matmul %19, %22, %cst_17 {dimension_numbers = #tpu.dot_dimension_numbers<[1], [1], [0], [0], [0, 0, 1, 0], [], []>} : vector<8x32xf32>, vector<128x32xf32>, vector<8x128xf32> -> vector<8x128xf32>
    %c0_18 = arith.constant 0 : index
    %c0_19 = arith.constant 0 : index
    %c0_20 = arith.constant 0 : index
    %24 = vector.load %arg7[%c0_18, %c0_19, %c0_20] : memref<1x8x128xf32, #tpu.memory_space<vmem>>, vector<1x8x128xf32>
    %25 = vector.shape_cast %24 : vector<1x8x128xf32> to vector<8x128xf32>
    %26 = vector.shape_cast %23 : vector<8x128xf32> to vector<1x8x128xf32>
    tpu.vector_store %arg7[%c0_18, %c0_19, %c0_20], %26 {strides = array<i32>} : memref<1x8x128xf32, #tpu.memory_space<vmem>>, vector<1x8x128xf32>,
    return
  }
  func.func @transform_0(%arg0: i32) -> (i32, i32, i32) {
    %c0_i32 = arith.constant 0 : i32
    %c0_i32_0 = arith.constant 0 : i32
    %c0_i32_1 = arith.constant 0 : i32
    return %arg0, %c0_i32, %c0_i32_0 : i32, i32, i32
  }
  func.func @transform_1(%arg0: i32) -> (i32, i32, i32) {
    %c0_i32 = arith.constant 0 : i32
    %c0_i32_0 = arith.constant 0 : i32
    %c0_i32_1 = arith.constant 0 : i32
    return %arg0, %c0_i32, %c0_i32_0 : i32, i32, i32
  }
  func.func @transform_2(%arg0: i32) -> (i32, i32) {
    %c0_i32 = arith.constant 0 : i32
    %c0_i32_0 = arith.constant 0 : i32
    %c0_i32_1 = arith.constant 0 : i32
    return %c0_i32, %c0_i32_0 : i32, i32
  }
  func.func @transform_3(%arg0: i32) -> (i32, i32) {
    %c0_i32 = arith.constant 0 : i32
    %c0_i32_0 = arith.constant 0 : i32
    %c0_i32_1 = arith.constant 0 : i32
    return %c0_i32, %c0_i32_0 : i32, i32
  }
  func.func @transform_4(%arg0: i32) -> (i32, i32) {
    %c0_i32 = arith.constant 0 : i32
    %c0_i32_0 = arith.constant 0 : i32
    %c0_i32_1 = arith.constant 0 : i32
    return %c0_i32, %c0_i32_0 : i32, i32
  }
  func.func @transform_5(%arg0: i32) -> (i32, i32) {
    %c0_i32 = arith.constant 0 : i32
    %c0_i32_0 = arith.constant 0 : i32
    %c0_i32_1 = arith.constant 0 : i32
    return %c0_i32, %c0_i32_0 : i32, i32
  }
  func.func @transform_6(%arg0: i32) -> (i32, i32, i32) {
    %c0_i32 = arith.constant 0 : i32
    %c0_i32_0 = arith.constant 0 : i32
    %c0_i32_1 = arith.constant 0 : i32
    return %arg0, %c0_i32, %c0_i32_0 : i32, i32, i32
  }
}

</mosaic_0001>

<bundles_post_ra>
// kernel: tpu_custom_call.1
= control target key start
LH: loop header
LB: loop body
LE: loop exit
PB: predicated region body
PF: predicated region fallthrough
CT: control target
= control target key end

     0   :  { %s1416_s0 = inlined_call_operand.hbm [shape: f32[2,8,32], index: 0, kind: input, shape index: {}]   ;;  %s1417_s1 = inlined_call_operand.hbm [shape: f32[2,8,32], index: 1, kind: input, shape index: {}]   ;;  %s1418_s2 = inlined_call_operand.hbm [shape: f32[32,32], index: 2, kind: input, shape index: {}]   ;;  %s1419_s3 = inlined_call_operand.vmem [shape: f32[1,32], index: 3, kind: input, shape index: {}]   ;;  %s1420_s4 = inlined_call_operand.hbm [shape: f32[32,32], index: 4, kind: input, shape index: {}]   ;;  %s1421_s5 = inlined_call_operand.vmem [shape: f32[1,32], index: 5, kind: input, shape index: {}]   ;;  %s1422_s6 = inlined_call_operand.hbm [shape: f32[2,8,128], index: 6, kind: output, shape index: {}]  }
   0x1   :  { %1427 = sst [smem:[#allocation17_spill]] %s1418_s2 }
   0x2   :  { %1428 = sst [smem:[#allocation18_spill]] %s1420_s4 }
   0x3   :  { %11 = vsyncpa [#allocation3], 0 }
   0x4   :  { %13 = vsyncpa [#allocation3 + $0x1], 0 }
   0x5   :  { %14 = vsyncpa [#allocation6], 0 }
   0x6   :  { %16 = vsyncpa [#allocation6 + $0x1], 0 }
   0x7   :  { %17 = vsyncpa [#allocation9], 0 }
   0x8   :  { %18 = vsyncpa [#allocation4], 0 }
   0x9   :  { %20 = vsyncpa [#allocation4 + $0x1], 0  ;;  %s1130_s21 = smov 0   ;;  %s1132_s22 = smov 0  }
   0xa   :  { %s1134_s23 = smov 0   ;;  %s1136_s24 = smov 0  }
   0xb LB: > { %s1151_s25 = sadd.s32 4294967295, %s1084_s24   ;;  %s730_s26 = sadd.s32 4294967294, %s1084_s24   ;;  %s1084_s24 = sphi %s1136_s24, %s1452_s24   ;;  %s1080_s23 = sphi %s1134_s23, %s1451_s23   ;;  %s1076_s22 = sphi %s1132_s22, %s1450_s22   ;;  %s1072_s21 = sphi %s1130_s21, %s1449_s21  }
   0xc   : > { %p46_p0 = scmp.ne.s32.totalorder %s1076_s22, %s1072_s21  ;;  %p1423_p1 = scmp.eq.s32.totalorder %s1151_s25, 0 }
   0xd   : > { %p186_p3 = scmp.eq.s32.totalorder %s730_s26, 1  ;;  %p731_p5 = scmp.ge.s32.totalorder %s1084_s24, 1 }
   0xe   : > { %p1160_p4 = por %p1423_p1, %p46_p0  ;;  %p193_p7 = scmp.lt.s32.totalorder %s1084_s24, 3 }
   0xf   : > { %p1165_p6 = por %p186_p3, %p46_p0  ;;  %s1086_s30 = smov [#allocation7]  }
  0x10   : > { %s1429_s27 = scalar_select %p1160_p4, 1, 0 }
  0x11   : > { %s1430_s28 = scalar_select %p1165_p6, 1, 0 }
  0x12   : > { %p1170_p8 = pnand %p731_p5, %p193_p7  ;;  %s205_s7 = sshll.u32 %s1086_s30, 4  ;;  %s1174_s7 = int_to_ptr.vmem [resolvable:$true] %s205_s7 }
  0x13   : > { %s1087_s9 = smov [#allocation8]   ;;  %s1433_s2 = sld [smem:[#allocation17_spill]] }
  0x14   : > { %s1431_s29 = scalar_select %p1170_p8, 1, 0 }
  0x15   : > { %p828_p9 = pneg %p1170_p8  ;;  %s221_s10 = sshll.u32 %s1087_s9, 4  ;;  %s1185_s10 = int_to_ptr.vmem [resolvable:$true] %s221_s10 }
  0x17   : > { %p1181_p11 = pnand %p828_p9, %p1423_p1 }
  0x19   : > { %s890_s13 = scalar_lea.hbm %s1433_s2, 512  ;;  %p892_p13 = pneg %p1181_p11 }
  0x1a   : > { %p891_p12 = scmp.ne.s32.totalorder %s1433_s2, %s890_s13  ;;  %p897_p5 = scmp.lt.u32.totalorder %s890_s13, %s1433_s2 }
  0x1c   : > { %p893_p0 = pnand %p892_p13, %p891_p12 }
  0x1e   : > { %p894_p3 = pneg %p893_p0 }
  0x20   : > { %p899_p7 = pnand %p897_p5, %p894_p3 }
  0x22   : > { %902 = shalt.err (!%p899_p7)
}
  0x23   : > { %s903_s18 = scalar_lea.vmem %s1174_s7, 512  ;;  %p911_p2 = scmp.lt.s32.totalorder %s1174_s7, %s1174_s7 }
  0x24   : > { %p904_p9 = scmp.ne.s32.totalorder %s1174_s7, %s903_s18  ;;  %p912_p12 = scmp.lt.s32.totalorder %s903_s18, %s903_s18 }
  0x26   : > { %p906_p10 = pnand %p904_p9, %p892_p13  ;;  %p913_p0 = por %p912_p12, %p911_p2 }
  0x28   : > { %p907_p1 = pneg %p906_p10 }
  0x2a   : > { %p914_p6 = pnand %p913_p0, %p907_p1 }
  0x2c   : > { %917 = shalt.err (!%p914_p6)
}
  0x2d   : > { %s1088_s19 = smov 128   ;;  %s1089_s20 = smov 8  }
  0x2e   : > { %831 = dma.hbm_to_vmem [thread:$0]  (!%p1181_p11), %s1433_s2, 512, %s1174_s7, [#allocation6], %s1088_s19, %s1088_s19, %s1089_s20  }
  0x2f   : > { %s1434_s4 = sld [smem:[#allocation18_spill]] }
  0x35   : > { %s918_s12 = scalar_lea.hbm %s1434_s4, 512 }
  0x36   : > { %p919_p2 = scmp.ne.s32.totalorder %s1434_s4, %s918_s12  ;;  %p925_p10 = scmp.lt.u32.totalorder %s918_s12, %s1434_s4 }
  0x38   : > { %p921_p1 = pnand %p919_p2, %p892_p13 }
  0x3a   : > { %p922_p6 = pneg %p921_p1 }
  0x3c   : > { %p927_p3 = pnand %p925_p10, %p922_p6 }
  0x3e   : > { %930 = shalt.err (!%p927_p3)
}
  0x3f   : > { %s931_s7 = scalar_lea.vmem %s1185_s10, 512  ;;  %p939_p12 = scmp.lt.s32.totalorder %s1185_s10, %s1185_s10 }
  0x40   : > { %p932_p5 = scmp.ne.s32.totalorder %s1185_s10, %s931_s7  ;;  %p940_p0 = scmp.lt.s32.totalorder %s931_s7, %s931_s7 }
  0x42   : > { %p934_p7 = pnand %p932_p5, %p892_p13  ;;  %p941_p2 = por %p940_p0, %p939_p12 }
  0x44   : > { %p935_p9 = pneg %p934_p7 }
  0x46   : > { %p942_p1 = pnand %p941_p2, %p935_p9 }
  0x48   : > { %945 = shalt.err (!%p942_p1)
}
  0x49   : > { %834 = dma.hbm_to_vmem [thread:$0]  (!%p1181_p11), %s1434_s4, 512, %s1185_s10, [#allocation9], %s1088_s19, %s1088_s19, %s1089_s20  }
  0x4a   : > { %s1240_s26 = sadd.s32 1, %s1084_s24   ;;  %s33_s8 = sadd.s32 1, %s1080_s23 }
  0x4b   : > { %s30_s30 = ssub.s32 %s1084_s24, %s1240_s26  ;;  %p40_p13 = scmp.ne.s32.totalorder %s1080_s23, %s1076_s22 }
  0x4c   : > { %p31_p6 = scmp.eq.s32.totalorder %s30_s30, 0  ;;  %p41_p10 = scmp.eq.s32.totalorder %s1084_s24, 0 }
  0x4d   : > { %p1435_p3 = scmp.eq.s32.totalorder %s1151_s25, 1  ;;  %p848_p7 = scmp.lt.s32.totalorder %s1084_s24, 2 }
  0x4e   : > { %s1256_s11 = scalar_select %p31_p6, %s1080_s23, %s33_s8  }
  0x4f   : > { %p1250_p5 = por %p1435_p3, %p40_p13  ;;  %p42_p9 = por %p41_p10, %p40_p13 }
  0x50   : > { %1437 = sst [smem:[#allocation16_spill]] %s1256_s11  ;;  %s238_s12 = sand.u32 1, %s1080_s23  }
  0x51   : > { %s1436_s9 = scalar_select %p1250_p5, 1, 0 }
  0x52   : > { %s1259_s10 = sshll.u32 %s238_s12, 3  ;;  %s736_s19 = sshll.u32 %s1084_s24, 7 }
  0x53   : > { %s1265_s14 = scalar_lea.hbm %s1416_s0, %s736_s19  ;;  %s242_s15 = scalar_lea.vmem [#allocation2], %s1259_s10 }
  0x54   : > { %s249_s16 = sshll.u32 %s242_s15, 4  ;;  %p1270_p11 = pnand %p848_p7, %p42_p9  ;;  %s1268_s16 = int_to_ptr.vmem [resolvable:$true] %s249_s16 }
  0x55   : > { %s1277_s8 = scalar_lea.hbm %s1417_s1, %s736_s19  ;;  %s256_s30 = sand.u32 1, %s1084_s24  }
  0x56   : > { %s239_s20 = scalar_lea.sflag [#allocation3], %s238_s12  ;;  %s946_s13 = scalar_lea.hbm %s1265_s14, 128 }
  0x57   : > { %p947_p12 = scmp.ne.s32.totalorder %s1265_s14, %s946_s13  ;;  %p948_p0 = pneg %p1270_p11 }
  0x58   : > { %s951_s4 = scalar_lea.hbm %s1416_s0, 256  ;;  %p952_p13 = scmp.lt.u32.totalorder %s1265_s14, %s1416_s0 }
  0x59   : > { %p949_p2 = pnand %p948_p0, %p947_p12  ;;  %p953_p6 = scmp.lt.u32.totalorder %s951_s4, %s946_s13 }
  0x5a   : > { %p955_p3 = scmp.lt.u32.totalorder %s946_s13, %s1265_s14 }
  0x5b   : > { %p950_p1 = pneg %p949_p2  ;;  %p954_p10 = por %p953_p6, %p952_p13 }
  0x5d   : > { %p956_p7 = por %p955_p3, %p954_p10 }
  0x5f   : > { %p957_p9 = pnand %p956_p7, %p950_p1 }
  0x61   : > { %960 = shalt.err (!%p957_p9)
}
  0x62   : > { %s961_s12 = scalar_lea.vmem %s1268_s16, 128  ;;  %s1090_s2 = smov [#allocation2]  }
  0x63   : > { %p962_p12 = scmp.ne.s32.totalorder %s1268_s16, %s961_s12  ;;  %s966_s19 = sshll.u32 %s1090_s2, 4  ;;  %s967_s19 = int_to_ptr.vmem [resolvable:$false] %s966_s19 }
  0x64   : > { %s968_s11 = scalar_lea.vmem %s967_s19, 256  ;;  %p969_p4 = scmp.lt.s32.totalorder %s1268_s16, %s967_s19 }
  0x65   : > { %p964_p2 = pnand %p962_p12, %p948_p0  ;;  %p970_p13 = scmp.lt.s32.totalorder %s968_s11, %s961_s12 }
  0x67   : > { %p965_p5 = pneg %p964_p2  ;;  %p971_p6 = por %p970_p13, %p969_p4 }
  0x69   : > { %p972_p10 = pnand %p971_p6, %p965_p5 }
  0x6b   : > { %975 = shalt.err (!%p972_p10)
}
  0x6c   : > { %838 = dma.hbm_to_vmem [thread:$0]  (!%p1270_p11), %s1265_s14, 128, %s1268_s16, %s239_s20  }
  0x6d   : > { %s260_s4 = scalar_lea.vmem [#allocation5], %s1259_s10  ;;  %s257_s13 = scalar_lea.sflag [#allocation6], %s256_s30 }
  0x6e   : > { %s267_s18 = sshll.u32 %s260_s4, 4  ;;  %s976_s15 = scalar_lea.hbm %s1277_s8, 128  ;;  %s268_s18 = int_to_ptr.vmem [resolvable:$true] %s267_s18 }
  0x6f   : > { %p977_p4 = scmp.ne.s32.totalorder %s1277_s8, %s976_s15  ;;  %s981_s2 = scalar_lea.hbm %s1417_s1, 256 }
  0x70   : > { %p982_p3 = scmp.lt.u32.totalorder %s1277_s8, %s1417_s1  ;;  %p983_p7 = scmp.lt.u32.totalorder %s981_s2, %s976_s15 }
  0x71   : > { %p979_p5 = pnand %p977_p4, %p948_p0  ;;  %p985_p12 = scmp.lt.u32.totalorder %s976_s15, %s1277_s8 }
  0x72   : > { %p984_p9 = por %p983_p7, %p982_p3 }
  0x73   : > { %p980_p1 = pneg %p979_p5 }
  0x74   : > { %p986_p2 = por %p985_p12, %p984_p9 }
  0x76   : > { %p987_p13 = pnand %p986_p2, %p980_p1 }
  0x78   : > { %990 = shalt.err (!%p987_p13)
}
  0x79   : > { %s991_s10 = scalar_lea.vmem %s268_s18, 128  ;;  %s1091_s14 = smov [#allocation5]  }
  0x7a   : > { %p992_p6 = scmp.ne.s32.totalorder %s268_s18, %s991_s10  ;;  %s996_s16 = sshll.u32 %s1091_s14, 4  ;;  %s997_s16 = int_to_ptr.vmem [resolvable:$false] %s996_s16 }
  0x7b   : > { %s998_s30 = scalar_lea.vmem %s997_s16, 256  ;;  %p999_p5 = scmp.lt.s32.totalorder %s268_s18, %s997_s16 }
  0x7c   : > { %p994_p10 = pnand %p992_p6, %p948_p0  ;;  %p1000_p8 = scmp.lt.s32.totalorder %s998_s30, %s991_s10 }
  0x7e   : > { %p995_p4 = pneg %p994_p10  ;;  %p1001_p3 = por %p1000_p8, %p999_p5 }
  0x80   : > { %p1002_p7 = pnand %p1001_p3, %p995_p4 }
  0x82   : > { %1005 = shalt.err (!%p1002_p7)
}
  0x83   : > { %841 = dma.hbm_to_vmem [thread:$0]  (!%p1270_p11), %s1277_s8, 128, %s268_s18, %s257_s13  }
  0x84   : > { %p1439_p1 = scmp.ne.s32.totalorder %s1431_s29, 0 }
  0x85   : > { %s1330_s20 = sand.u32 (!%p1439_p1), 1, %s1076_s22   ;;  %p1440_p8 = scmp.ne.s32.totalorder (!%p1439_p1), %s1429_s27, 0 }
  0x86   : > { %276 = sbr.rel (%p1439_p1) target bundleno = 826 (0x33a), region = 44  ;;  %s1333_s4 = sshll.u32 (!%p1439_p1), %s1330_s20, 3 }
  0x87   : > { %s279_s15 = scalar_lea.sflag (!%p1439_p1), [#allocation3], %s1330_s20  ;;  %s282_s17 = scalar_lea.vmem (!%p1439_p1), [#allocation2], %s1333_s4 }
  0x8d   : > { %1051 = dma.done.wait (%p1440_p8), %s279_s15, 128  }
  0x8e   : > { %1053 = vsyncadd (%p1440_p8), %s279_s15, 4294967168  ;;  %s287_s29 = sand.u32 1, %s1151_s25   ;;  %s291_s8 = scalar_lea.vmem [#allocation5], %s1333_s4 }
  0x8f   : > { %s288_s7 = scalar_lea.sflag [#allocation6], %s287_s29 }
  0x90   : > { %1055 = dma.done.wait (%p1440_p8), %s288_s7, 128  }
  0x91   : > { %1057 = vsyncadd (%p1440_p8), %s288_s7, 4294967168  ;;  %p1441_p11 = scmp.eq.s32.totalorder %s1151_s25, 0 }
  0x93   : > { %1059 = dma.done.wait (%p1441_p11), [#allocation6], 512   ;;  %p1442_p0 = pmov %p1441_p11 }
  0x95   : > { %1061 = vsyncadd (%p1442_p0), [#allocation6], 4294966784  ;;  %p1443_p9 = pmov %p1442_p0 }
  0x96   : > { %p1444_p12 = pmov %p1442_p0 }
  0x97   : > { %1063 = dma.done.wait (%p1443_p9), [#allocation9], 512  }
  0x98   : > { %1065 = vsyncadd (%p1444_p12), [#allocation9], 4294966784  ;;  %vm351_vm0 = vcmask 261120   ;;  %v335_v0 = vld [vmem:[#allocation7] sm:$0xff]  ;;  %v336_v1 = vld [vmem:[#allocation7 + $0x8] sm:$0xff]  ;;  %v1092_v21 = vmov 0.0  }
  0x99   : > { %v337_v2 = vld [vmem:[#allocation7 + $0x10] sm:$0xff]  ;;  %v798_v3 = vpack.c.bf16 %v336_v1, %v335_v0  ;;  %v338_v4 = vld [vmem:[#allocation7 + $0x18] sm:$0xff]  ;;  %v333_v5 = vld [vmem:[%s282_s17] sm:$0xff]  ;;  %vm1093_vm1 = vmmov 0   ;;  %s332_s2 = scalar_lea.vmem [#allocation10], %s1333_s4  ;;  %s754_s11 = sshll.u32 %s1151_s25, 7 }
  0x9a   : > { %v802_v6 = vpack.c.bf16 %v338_v4, %v337_v2  ;;  %779 = vmatprep.mubr.msk.f32.mxu0 %vm351_vm0, %v333_v5  ;;  %v340_v7 = vld [vmem:[#allocation8] sm:$0xff]  ;;  %v341_v8 = vld [vmem:[#allocation8 + $0x8] sm:$0xff]  ;;  %v334_v10 = vld [vmem:[%s291_s8] sm:$0xff]  ;;  %s618_s19 = sshll.u32 %s332_s2, 4  ;;  %s1374_s16 = scalar_lea.hbm %s1422_s6, %s754_s11  ;;  %s1369_s19 = int_to_ptr.vmem [resolvable:$true] %s618_s19 }
  0x9b   : > { %799 = vmatprep.subr.bf16.mxu0 %v798_v3  ;;  %v806_v9 = vpack.c.bf16 %v341_v8, %v340_v7  ;;  %v342_v11 = vld [vmem:[#allocation8 + $0x10] sm:$0xff]  ;;  %v343_v12 = vld [vmem:[#allocation8 + $0x18] sm:$0xff]  ;;  %v745_v14 = vld [vmem:[%s1419_s3] ss:$0 sm:$0xff]  ;;  %s605_s30 = scalar_lea.sflag [#allocation4], %s1330_s20  ;;  %s1006_s15 = scalar_lea.vmem %s1369_s19, 128 }
  0x9c   : > { %801 = vmatpush3.bf16.msra.mxu0 %v798_v3  ;;  %v810_v13 = vpack.c.bf16 %v343_v12, %v342_v11  ;;  %v748_v22 = vld [vmem:[%s1421_s5] ss:$0 sm:$0xff]  ;;  %p1007_p2 = scmp.ne.s32.totalorder %s1369_s19, %s1006_s15  ;;  %p1445_p13 = scmp.ne.s32.totalorder %s1436_s9, 0 }
  0x9d   : > { %803 = vmatprep.subr.bf16.mxu0 %v802_v6  ;;  %807 = vmatprep.subr.bf16.mxu1 %v806_v9  ;;  %s1094_s25 = smov [#allocation10]  }
  0x9e   : > { %809 = vmatpush3.bf16.msra.mxu1 %v806_v9  ;;  %p1008_p6 = pnand %p1007_p2, %p1445_p13  ;;  %s1010_s4 = sshll.u32 %s1094_s25, 4  ;;  %s1011_s4 = int_to_ptr.vmem [resolvable:$false] %s1010_s4 }
  0x9f   : > { %811 = vmatprep.subr.bf16.mxu1 %v810_v13  ;;  %s1012_s17 = scalar_lea.vmem %s1011_s4, 256  ;;  %p1013_p4 = scmp.lt.s32.totalorder %s1369_s19, %s1011_s4 }
  0xa0   : > { %805 = vmatpush3.bf16.msra.mxu0 %v802_v6  ;;  %p1009_p10 = pneg %p1008_p6  ;;  %p1014_p5 = scmp.lt.s32.totalorder %s1012_s17, %s1006_s15 }
  0xa1   : > { %793 = vmatprep.subr.mxu0 %v1092_v21 }
  0xa2   : > { %813 = vmatpush3.bf16.msra.mxu1 %v810_v13  ;;  %p1015_p3 = por %p1014_p5, %p1013_p4 }
  0xa3   : > { %780 = vmatmul.mubr.msk.f32.vlgmr.msra.gmra.mrb[0].mxu0 %vm351_vm0, %v334_v10 }
  0xa4   : > { %795 = vmatprep.mubr.msk.f32.mxu0 %vm1093_vm1, %v1092_v21  ;;  %p1016_p7 = pnand %p1015_p3, %p1009_p10 }
 0x176   : > { %v781_v15 = vpop.f32.mrb[0].mxu0 }
 0x177   : > { %v430_v16 = vadd.f32 %v781_v15, %v745_v14  ;;  %v424_v17 = vpop.f32.mrb[1].mxu0 }
 0x178   : > { %v425_v18 = vadd.f32 %v745_v14, %v424_v17 }
 0x179   : > { %v434_v20 = vmax.f32 %v430_v16, 0.0 }
 0x17a   : > { %v433_v19 = vmax.f32 %v425_v18, 0.0 }
 0x17c   : > { %790 = vmatprep.mubr.msk.f32.mxu1 %vm351_vm0, %v433_v19 }
 0x17d   : > { %791 = vmatmul.mubr.msk.f32.vlgmr.msra.gmra.mrb[0].mxu1 %vm351_vm0, %v434_v20 }
 0x250   : > { %v792_v23 = vpop.f32.mrb[0].mxu1 }
 0x251   : > { %v519_v24 = vadd.f32 %v792_v23, %v748_v22  ;;  %v513_v25 = vpop.f32.mrb[1].mxu1 }
 0x252   : > { %v514_v26 = vadd.f32 %v748_v22, %v513_v25 }
 0x253   : > { %v523_v27 = vmax.f32 %v519_v24, 0.0 }
 0x254   : > { %v522_v28 = vmax.f32 %v514_v26, 0.0 }
 0x255   : > { %794 = vmatpush3.xpose.msk.msra.mxu0 %vm351_vm0, %v523_v27 }
 0x258   : > { %796 = vmatmul.mubr.msk.f32.vlgmr.msra.gmra.mrb[2].mxu0 %vm351_vm0, %v522_v28 }
 0x32b   : > { %v599_v29 = vpop.f32.mrb[2].mxu0 }
 0x32c   : > { %603 = vst [vmem:[%s332_s2] sm:$0xff] %v599_v29  ;;  %v797_v30 = vpop.f32.mrb[3].mxu0 }
 0x32d   : > { %1019 = shalt.err (!%p1016_p7)
}
 0x32e   : > { %s1020_s20 = scalar_lea.hbm %s1374_s16, 128  ;;  %s1024_s8 = scalar_lea.hbm %s1422_s6, 256 }
 0x32f   : > { %p1021_p1 = scmp.ne.s32.totalorder %s1374_s16, %s1020_s20  ;;  %p1025_p0 = scmp.lt.u32.totalorder %s1374_s16, %s1422_s6 }
 0x330   : > { %p1026_p9 = scmp.lt.u32.totalorder %s1024_s8, %s1020_s20  ;;  %p1028_p2 = scmp.lt.u32.totalorder %s1020_s20, %s1374_s16 }
 0x331   : > { %p1022_p8 = pnand %p1021_p1, %p1445_p13 }
 0x332   : > { %p1027_p12 = por %p1026_p9, %p1025_p0 }
 0x333   : > { %p1023_p11 = pneg %p1022_p8 }
 0x334   : > { %p1029_p6 = por %p1028_p2, %p1027_p12 }
 0x336   : > { %p1030_p10 = pnand %p1029_p6, %p1023_p11 }
 0x338   : > { %1033 = shalt.err (!%p1030_p10)
}
 0x339   : > { %826 = dma.vmem_to_hbm [thread:$0]  (%p1445_p13), %s1369_s19, 128, %s1374_s16, %s605_s30  }
 0x33a PF: > { %s630_s13 = sand.u32 1, %s1072_s21   ;;  %p1446_p4 = scmp.ne.s32.totalorder %s1430_s28, 0 }
 0x33b   : > { %p1447_p5 = scmp.ge.s32.totalorder %s1084_s24, 2  ;;  %s631_s12 = scalar_lea.sflag [#allocation4], %s630_s13 }
 0x33d   : > { %p843_p3 = pnand %p1447_p5, %p1446_p4 }
 0x33f   : > { %1067 = dma.done.wait (!%p843_p3), %s631_s12, 128  }
 0x340   : > { %1069 = vsyncadd (!%p843_p3), %s631_s12, 4294967168  ;;  %s1448_s2 = sld [smem:[#allocation16_spill]]  ;;  %p23_p7 = scmp.ge.s32.totalorder %s1240_s26, 4  }
 0x341   : > { %s1449_s21 = smov %s1076_s22  ;;  %s1450_s22 = smov %s1080_s23 }
 0x342   : > { %s1452_s24 = smov %s1240_s26  ;;  %25 = sbr.rel (!%p23_p7) target bundleno = 11 (0xb), region = 110 }
 0x346   : > { %s1451_s23 = smov %s1448_s2 }
 0x349   :  { %636 = vsyncpa [#allocation3], 1 }
 0x34a   :  { %638 = vsyncpa [#allocation3 + $0x1], 1 }
 0x34b   :  { %639 = vsyncpa [#allocation6], 1 }
 0x34c   :  { %641 = vsyncpa [#allocation6 + $0x1], 1 }
 0x34d   :  { %642 = vsyncpa [#allocation9], 1 }
 0x34e   :  { %643 = vsyncpa [#allocation4], 1 }
 0x34f   :  { %645 = vsyncpa [#allocation4 + $0x1], 1 }

</bundles_post_ra>
